<compile_context>
chip_gen: v7x
topology: tpu7x:2x2x1
jax: 0.10.0
libtpu: 0.0.40
codegen_flags: <defaults>
</compile_context>

<pallas_src>
import functools
import math

import jax
import jax.numpy as jnp
from jax import lax
from jax.experimental import pallas as pl
from jax.experimental.pallas import tpu as pltpu


# ----------------------------------------------------------------------------
# Helpers
# ----------------------------------------------------------------------------
def _sublane_min(dtype):
    """Minimum legal second-minor tile size for a dtype."""
    return {4: 8, 2: 16, 1: 32}.get(jnp.dtype(dtype).itemsize, 8)


def _vmem_caps():
    """(physical VMEM bytes, conservative per-kernel budget)."""
    phys = 64 << 20                      # v7x-safe default if the query fails
    try:
        phys = int(getattr(pltpu.get_tpu_info(), "vmem_capacity_bytes", phys))
    except Exception:
        pass
    return phys, min(phys // 2, 48 << 20)


def _divisor_tile(dim, cap, step):
    """Largest tile <= cap dividing `dim`, preferring multiples of 128 then of
    `step` (dtype sublane minimum).  Falls back to the full dim (always legal)."""
    dim = int(dim)
    cap = int(max(min(cap, dim), step))
    for s in (128, step):
        if s > cap:
            continue
        t = (cap // s) * s
        while t >= s:
            if dim % t == 0:
                return t
            t -= s
    return dim


# ----------------------------------------------------------------------------
# Fused projection kernel: one x-read, one wide matmul, N sliced outputs.
# ----------------------------------------------------------------------------
def _fused_linear_kernel(*refs, widths, has_bias):
    n_in = 3 if has_bias else 2
    x_ref, w_ref = refs[0], refs[1]
    out_refs = refs[n_in:]
    y = jnp.dot(x_ref[...], w_ref[...], preferred_element_type=jnp.float32)
    if has_bias:
        y = y + refs[2][...].astype(jnp.float32)
    off = 0
    for r, w in zip(out_refs, widths):
        r[...] = y[:, off:off + w].astype(r.dtype)
        off += w


def _fused_linear(x2d, w_cat, widths, *, bias=None, out_dtype=None):
    """x2d: (rows, Din); w_cat: (Din, sum(widths)) (already transposed);
    bias: (sum(widths),) or None.  Returns a tuple of (rows, w_i) arrays."""
    rows, din = x2d.shape
    dtot = int(w_cat.shape[1])
    widths = tuple(int(w) for w in widths)
    assert sum(widths) == dtot
    out_dtype = x2d.dtype if out_dtype is None else out_dtype

    step = _sublane_min(x2d.dtype)
    tm = _divisor_tile(rows, 512, step)
    itm = jnp.dtype(x2d.dtype).itemsize
    phys, _ = _vmem_caps()
    est = 2 * (tm * din + din * dtot) * itm + 2 * tm * dtot * max(itm, 4) + tm * dtot * 4
    vmem_limit = int(min(max(2 * est, 16 << 20), (phys * 3) // 4))

    in_specs = [pl.BlockSpec((tm, din), lambda i: (i, 0)),
                pl.BlockSpec((din, dtot), lambda i: (0, 0))]
    args = [x2d, w_cat]
    if bias is not None:
        in_specs.append(pl.BlockSpec((1, dtot), lambda i: (0, 0)))
        args.append(bias.reshape(1, dtot))

    out_shape = tuple(jax.ShapeDtypeStruct((rows, w), out_dtype) for w in widths)
    out_specs = tuple(pl.BlockSpec((tm, w), lambda i: (i, 0)) for w in widths)

    kernel = functools.partial(_fused_linear_kernel, widths=widths,
                               has_bias=bias is not None)
    outs = pl.pallas_call(
        kernel,
        out_shape=out_shape,
        grid_spec=pltpu.PrefetchScalarGridSpec(
            num_scalar_prefetch=0,
            grid=(rows // tm,),
            in_specs=in_specs,
            out_specs=out_specs,
        ),
        compiler_params=pltpu.CompilerParams(
            dimension_semantics=("parallel",),
            vmem_limit_bytes=vmem_limit),
    )(*args)
    return tuple(outs)


# ----------------------------------------------------------------------------
# Flash attention (online softmax), heads packed into the lane dimension.
# Q is already scaled by 1/sqrt(dim_head) (folded into the projection weight).
# ----------------------------------------------------------------------------
def _flash_kernel(q_ref, k_ref, v_ref, o_ref, m_ref, l_ref, acc_ref, *,
                  hpb, dh, tk, kv_len, mask_kv):
    kv = pl.program_id(3)

    @pl.when(kv == 0)
    def _init():
        m_ref[...] = jnp.full_like(m_ref, -jnp.inf)
        l_ref[...] = jnp.zeros_like(l_ref)
        acc_ref[...] = jnp.zeros_like(acc_ref)

    if mask_kv:
        col = lax.broadcasted_iota(jnp.int32, (1, tk), 1)
        valid = (kv * tk + col) < kv_len

    for h in range(hpb):                        # static unroll over packed heads
        lo = h * dh
        qh = q_ref[:, lo:lo + dh]               # (tq, dh)
        kh = k_ref[:, lo:lo + dh]               # (tk, dh)
        s = lax.dot_general(qh, kh, (((1,), (1,)), ((), ())),
                            preferred_element_type=jnp.float32)      # (tq, tk)
        if mask_kv:
            s = jnp.where(valid, s, -jnp.inf)

        m_prev = m_ref[:, h:h + 1]
        m_new = jnp.maximum(m_prev, jnp.max(s, axis=-1, keepdims=True))
        alpha = jnp.exp(m_prev - m_new)
        p = jnp.exp(s - m_new)
        l_ref[:, h:h + 1] = alpha * l_ref[:, h:h + 1] + jnp.sum(p, axis=-1, keepdims=True)

        vh = v_ref[:, lo:lo + dh]               # (tk, dh)
        pv = lax.dot_general(p.astype(vh.dtype), vh, (((1,), (0,)), ((), ())),
                             preferred_element_type=jnp.float32)     # (tq, dh)
        acc_ref[:, lo:lo + dh] = alpha * acc_ref[:, lo:lo + dh] + pv
        m_ref[:, h:h + 1] = m_new

    @pl.when(kv == pl.num_programs(3) - 1)
    def _finalize():
        for h in range(hpb):
            lo = h * dh
            inv = 1.0 / l_ref[:, h:h + 1]       # exact: once per q tile only
            o_ref[:, lo:lo + dh] = (acc_ref[:, lo:lo + dh] * inv).astype(o_ref.dtype)


def _flash_attention(q, k, v, *, heads, dim_head):
    """q: (B, N, heads*dh) pre-scaled; k, v: (B, M, heads*dh).
    Returns (B, N, heads*dh) in the same merged-head layout (no transposes)."""
    B, N, inner = q.shape
    M = int(k.shape[1])
    dh = int(dim_head)
    assert inner == heads * dh

    # Pack heads so the lane width of every tile is a multiple of 128, or the
    # full inner dim when inner < 128 -> legal block shapes + unmasked stores.
    hpb = heads
    for c in range(1, heads + 1):
        if heads % c == 0 and (c * dh) % 128 == 0:
            hpb = c
            break
    HP = hpb * dh
    n_hb = heads // hpb

    itm = jnp.dtype(q.dtype).itemsize
    step = _sublane_min(q.dtype)
    phys, budget = _vmem_caps()

    tq = _divisor_tile(N, 512, step)
    if tq > 1024:                               # no divisor: capped + masked tail
        tq = int(max(step, (512 // step) * step))

    # VMEM accounting: double-buffered q/o + k/v tiles, f32 accumulator,
    # lane-padded m/l stats, and the (tq, tk) f32 S/P intermediates.
    fixed = 4 * tq * HP * itm + tq * HP * 4 + 2 * tq * 128 * 4
    per_tk = 4 * HP * itm + 2 * tq * 4
    avail = budget - fixed
    tk_cap = step if avail <= 0 else max(step, avail // per_tk)
    tk_cap = int(min(tk_cap, max(step, (128 * 1024) // max(tq, 1)), 2048))
    tk = _divisor_tile(M, tk_cap, step)
    if tk > max(tk_cap, step):                  # no divisor under cap: mask tail
        tk = int(max(step, (min(tk_cap, M) // step) * step))
    mask_kv = (M % tk) != 0

    nq = pl.cdiv(N, tq)
    nk = pl.cdiv(M, tk)

    est = fixed + per_tk * tk
    vmem_limit = int(min(max(2 * est, 16 << 20), (phys * 3) // 4))

    kv_passes = nq if nk > 1 else 1             # KV resident when a single block
    cost = pl.CostEstimate(
        flops=int(4 * B * heads * N * M * dh),
        transcendentals=int(B * heads * N * M),
        bytes_accessed=int((q.size + (k.size + v.size) * kv_passes + q.size) * itm),
    )

    kernel = functools.partial(_flash_kernel, hpb=hpb, dh=dh, tk=tk,
                               kv_len=M, mask_kv=mask_kv)

    return pl.pallas_call(
        kernel,
        out_shape=jax.ShapeDtypeStruct((B, N, inner), q.dtype),
        grid_spec=pltpu.PrefetchScalarGridSpec(
            num_scalar_prefetch=0,
            grid=(B, n_hb, nq, nk),
            in_specs=[
                pl.BlockSpec((pl.Squeezed(), tq, HP), lambda b, hb, qi, ki: (b, qi, hb)),
                pl.BlockSpec((pl.Squeezed(), tk, HP), lambda b, hb, qi, ki: (b, ki, hb)),
                pl.BlockSpec((pl.Squeezed(), tk, HP), lambda b, hb, qi, ki: (b, ki, hb)),
            ],
            out_specs=pl.BlockSpec((pl.Squeezed(), tq, HP),
                                   lambda b, hb, qi, ki: (b, qi, hb)),
            scratch_shapes=[
                pltpu.VMEM((tq, hpb), jnp.float32),   # running max (one col/head)
                pltpu.VMEM((tq, hpb), jnp.float32),   # running denominator
                pltpu.VMEM((tq, HP), jnp.float32),    # PV accumulator
            ],
        ),
        compiler_params=pltpu.CompilerParams(
            dimension_semantics=("parallel", "parallel", "parallel", "arbitrary"),
            vmem_limit_bytes=vmem_limit),
        cost_estimate=cost,
    )(q, k, v)


# ----------------------------------------------------------------------------
# Module wrapper (matches MemoryEfficientCrossAttention.forward defaults)
# ----------------------------------------------------------------------------
def memory_efficient_cross_attention(x, wq, wk, wv, wo, bo, *, heads, dim_head,
                                     context=None):
    """x: (B, N, query_dim); context: (B, M, context_dim) or None (self-attn).
    wq/wk/wv: (inner, in_dim) as in nn.Linear; wo: (query_dim, inner); bo: (query_dim,)."""
    self_attn = context is None
    if self_attn:
        context = x
    B, N, Dq = x.shape
    _, M, Dc = context.shape
    inner = heads * dim_head
    assert wq.shape == (inner, Dq) and wk.shape == (inner, Dc) and wv.shape == (inner, Dc)
    assert wo.shape == (Dq, inner) and bo.shape == (Dq,)

    scale = 1.0 / math.sqrt(dim_head)
    # Weight-side prep (tiny, one-time): transpose to (Din, Dout) and fold the
    # softmax scale into the Q projection weight.
    wq_t = jnp.transpose(wq) * jnp.asarray(scale, wq.dtype)
    wk_t = jnp.transpose(wk)
    wv_t = jnp.transpose(wv)
    wo_t = jnp.transpose(wo)

    if self_attn:
        w_qkv = jnp.concatenate([wq_t, wk_t, wv_t], axis=1)       # (Dq, 3*inner)
        q, k, v = _fused_linear(x.reshape(B * N, Dq), w_qkv,
                                (inner, inner, inner), out_dtype=x.dtype)
    else:
        (q,) = _fused_linear(x.reshape(B * N, Dq), wq_t, (inner,), out_dtype=x.dtype)
        w_kv = jnp.concatenate([wk_t, wv_t], axis=1)              # (Dc, 2*inner)
        k, v = _fused_linear(context.reshape(B * M, Dc), w_kv,
                             (inner, inner), out_dtype=x.dtype)

    # (B*L, inner) -> (B, L, inner): pure reshape, no head-split transpose.
    o = _flash_attention(q.reshape(B, N, inner), k.reshape(B, M, inner),
                         v.reshape(B, M, inner), heads=heads, dim_head=dim_head)

    # Heads are already merged in the layout; output projection with bias.
    # Dropout(p=0.0) is an identity.
    (y,) = _fused_linear(o.reshape(B * N, inner), wo_t, (Dq,), bias=bo,
                         out_dtype=x.dtype)
    return y.reshape(B, N, Dq)


# ----------------------------------------------------------------------------
# Pure-JAX reference (matches the PyTorch module forward, default path)
# ----------------------------------------------------------------------------
def _reference(x, wq, wk, wv, wo, bo, *, heads, dim_head, context=None):
    if context is None:
        context = x
    B, N, _ = x.shape
    inner = heads * dim_head
    q = x @ wq.T
    k = context @ wk.T
    v = context @ wv.T

    def split(t):
        return t.reshape(B, t.shape[1], heads, dim_head).transpose(0, 2, 1, 3)

    qh, kh, vh = split(q), split(k), split(v)
    s = jnp.einsum("bhnd,bhmd->bhnm", qh, kh) / math.sqrt(dim_head)
    p = jax.nn.softmax(s, axis=-1)
    o = jnp.einsum("bhnm,bhmd->bhnd", p, vh)
    o = o.transpose(0, 2, 1, 3).reshape(B, N, inner)
    return o @ wo.T + bo


if __name__ == "__main__":
    key = jax.random.PRNGKey(0)
    TOL = 5e-3

    # ---------------- Case 1: self-attention ----------------
    B, N, query_dim, heads, dim_head = 2, 64, 32, 2, 16
    inner = heads * dim_head
    k1, k2, k3, k4, k5, k6 = jax.random.split(key, 6)
    x = jax.random.normal(k1, (B, N, query_dim), dtype=jnp.float32)
    wq = jax.random.normal(k2, (inner, query_dim), dtype=jnp.float32) * 0.1
    wk = jax.random.normal(k3, (inner, query_dim), dtype=jnp.float32) * 0.1
    wv = jax.random.normal(k4, (inner, query_dim), dtype=jnp.float32) * 0.1
    wo = jax.random.normal(k5, (query_dim, inner), dtype=jnp.float32) * 0.1
    bo = jax.random.normal(k6, (query_dim,), dtype=jnp.float32) * 0.1

    out = jax.block_until_ready(memory_efficient_cross_attention(
        x, wq, wk, wv, wo, bo, heads=heads, dim_head=dim_head))
    ref = _reference(x, wq, wk, wv, wo, bo, heads=heads, dim_head=dim_head)
    assert out.shape == (B, N, query_dim)
    err = float(jnp.max(jnp.abs(out - ref)))
    assert err < TOL, f"self-attn max abs err {err}"

    # -------- Case 2: cross-attention (separate context source) --------
    M, context_dim = 48, 24
    k7, k8, k9, _ = jax.random.split(k6, 4)
    ctx = jax.random.normal(k7, (B, M, context_dim), dtype=jnp.float32)
    wk2 = jax.random.normal(k8, (inner, context_dim), dtype=jnp.float32) * 0.1
    wv2 = jax.random.normal(k9, (inner, context_dim), dtype=jnp.float32) * 0.1

    out2 = jax.block_until_ready(memory_efficient_cross_attention(
        x, wq, wk2, wv2, wo, bo, heads=heads, dim_head=dim_head, context=ctx))
    ref2 = _reference(x, wq, wk2, wv2, wo, bo, heads=heads, dim_head=dim_head,
                      context=ctx)
    err2 = float(jnp.max(jnp.abs(out2 - ref2)))
    assert err2 < TOL, f"cross-attn max abs err {err2}"

    print("KERNEL_OK")
</pallas_src>

<mosaic_0001>
module attributes {stable_mosaic.version = 11 : i64} {
  func.func @_fused_linear_kernel(%arg0: i32, %arg1: memref<128x32xf32, #tpu.memory_space<vmem>>, %arg2: memref<32x96xf32, #tpu.memory_space<vmem>>, %arg3: memref<128x32xf32, #tpu.memory_space<vmem>>, %arg4: memref<128x32xf32, #tpu.memory_space<vmem>>, %arg5: memref<128x32xf32, #tpu.memory_space<vmem>>) attributes {dimension_semantics = [#tpu.dimension_semantics<parallel>], iteration_bounds = array<i64: 1>, scalar_prefetch = 0 : i64, scratch_operands = 0 : i64, tpu.core_type = #tpu.core_type<tc>, window_params = [{transform_indices = @transform_0, window_bounds = array<i64: 128, 32>}, {pipeline_mode = #tpu.pipeline_mode<synchronous>, transform_indices = @transform_1, window_bounds = array<i64: 32, 96>}, {transform_indices = @transform_2, window_bounds = array<i64: 128, 32>}, {transform_indices = @transform_3, window_bounds = array<i64: 128, 32>}, {transform_indices = @transform_4, window_bounds = array<i64: 128, 32>}]} {
    %c0 = arith.constant 0 : index
    %c0_0 = arith.constant 0 : index
    %0 = vector.load %arg1[%c0, %c0_0] : memref<128x32xf32, #tpu.memory_space<vmem>>, vector<128x32xf32>
    %c0_1 = arith.constant 0 : index
    %c0_2 = arith.constant 0 : index
    %1 = vector.load %arg2[%c0_1, %c0_2] : memref<32x96xf32, #tpu.memory_space<vmem>>, vector<32x96xf32>
    %cst = arith.constant dense<0.000000e+00> : vector<128x96xf32>
    %2 = tpu.matmul %0, %1, %cst {dimension_numbers = #tpu.dot_dimension_numbers<[1], [0], [0], [1], [0, 0, 1, 1], [], []>} : vector<128x32xf32>, vector<32x96xf32>, vector<128x96xf32> -> vector<128x96xf32>
    %3 = vector.extract_strided_slice %2 {offsets = [0, 0], sizes = [128, 32], strides = [1, 1]} : vector<128x96xf32> to vector<128x32xf32>
    %c0_3 = arith.constant 0 : index
    %c0_4 = arith.constant 0 : index
    %4 = vector.load %arg3[%c0_3, %c0_4] : memref<128x32xf32, #tpu.memory_space<vmem>>, vector<128x32xf32>
    tpu.vector_store %arg3[%c0_3, %c0_4], %3 {strides = array<i32>} : memref<128x32xf32, #tpu.memory_space<vmem>>, vector<128x32xf32>,
    %5 = vector.extract_strided_slice %2 {offsets = [0, 32], sizes = [128, 32], strides = [1, 1]} : vector<128x96xf32> to vector<128x32xf32>
    %c0_5 = arith.constant 0 : index
    %c0_6 = arith.constant 0 : index
    %6 = vector.load %arg4[%c0_5, %c0_6] : memref<128x32xf32, #tpu.memory_space<vmem>>, vector<128x32xf32>
    tpu.vector_store %arg4[%c0_5, %c0_6], %5 {strides = array<i32>} : memref<128x32xf32, #tpu.memory_space<vmem>>, vector<128x32xf32>,
    %7 = vector.extract_strided_slice %2 {offsets = [0, 64], sizes = [128, 32], strides = [1, 1]} : vector<128x96xf32> to vector<128x32xf32>
    %c0_7 = arith.constant 0 : index
    %c0_8 = arith.constant 0 : index
    %8 = vector.load %arg5[%c0_7, %c0_8] : memref<128x32xf32, #tpu.memory_space<vmem>>, vector<128x32xf32>
    tpu.vector_store %arg5[%c0_7, %c0_8], %7 {strides = array<i32>} : memref<128x32xf32, #tpu.memory_space<vmem>>, vector<128x32xf32>,
    return
  }
  func.func @transform_0(%arg0: i32) -> (i32, i32) {
    %c0_i32 = arith.constant 0 : i32
    %c0_i32_0 = arith.constant 0 : i32
    return %arg0, %c0_i32 : i32, i32
  }
  func.func @transform_1(%arg0: i32) -> (i32, i32) {
    %c0_i32 = arith.constant 0 : i32
    %c0_i32_0 = arith.constant 0 : i32
    %c0_i32_1 = arith.constant 0 : i32
    return %c0_i32, %c0_i32_0 : i32, i32
  }
  func.func @transform_2(%arg0: i32) -> (i32, i32) {
    %c0_i32 = arith.constant 0 : i32
    %c0_i32_0 = arith.constant 0 : i32
    return %arg0, %c0_i32 : i32, i32
  }
  func.func @transform_3(%arg0: i32) -> (i32, i32) {
    %c0_i32 = arith.constant 0 : i32
    %c0_i32_0 = arith.constant 0 : i32
    return %arg0, %c0_i32 : i32, i32
  }
  func.func @transform_4(%arg0: i32) -> (i32, i32) {
    %c0_i32 = arith.constant 0 : i32
    %c0_i32_0 = arith.constant 0 : i32
    return %arg0, %c0_i32 : i32, i32
  }
}

</mosaic_0001>

<bundles_post_ra>
// kernel: tpu_custom_call.1
= control target key start
LH: loop header
LB: loop body
LE: loop exit
PB: predicated region body
PF: predicated region fallthrough
CT: control target
= control target key end

     0   :  { %vm34_vm0 = vcmask 261120   ;;  %s482_s5 = smov 96   ;;  %s483_s9 = smov 64   ;;  %s809_s1 = inlined_call_operand.vmem [shape: f32[32,96], index: 1, kind: input, shape index: {}]   ;;  %s810_s0 = inlined_call_operand.vmem [shape: f32[128,32], index: 0, kind: input, shape index: {}]   ;;  %s811_s2 = inlined_call_operand.vmem [shape: f32[128,32], index: 2, kind: output, shape index: {0}]   ;;  %s812_s3 = inlined_call_operand.vmem [shape: f32[128,32], index: 3, kind: output, shape index: {1}]   ;;  %s813_s4 = inlined_call_operand.vmem [shape: f32[128,32], index: 4, kind: output, shape index: {2}]  }
   0x1   :  { %v30_v0 = vld [vmem:[%s809_s1] sm:$0xff]  ;;  %v31_v1 = vld [vmem:[%s809_s1 + $0x8] sm:$0xff]  ;;  %v32_v2 = vld [vmem:[%s809_s1 + $0x10] sm:$0xff] }
   0x2   :  { %v468_v3 = vpack.c.bf16 %v31_v1, %v30_v0  ;;  %v33_v4 = vld [vmem:[%s809_s1 + $0x18] sm:$0xff]  ;;  %v14_v5 = vld [vmem:[%s810_s0] sm:$0xff]  ;;  %v15_v8 = vld [vmem:[%s810_s0 + $0x8] sm:$0xff] }
   0x3   :  { %v22_v6 = vld [vmem:[%s810_s0 + $0x40] sm:$0xff]  ;;  %v472_v7 = vpack.c.bf16 %v33_v4, %v32_v2  ;;  %444 = vmatprep.mubr.msk.f32.mxu0 %vm34_vm0, %v14_v5  ;;  %v23_v9 = vld [vmem:[%s810_s0 + $0x48] sm:$0xff]  ;;  %v16_v10 = vld [vmem:[%s810_s0 + $0x10] sm:$0xff] }
   0x4   :  { %456 = vmatprep.mubr.msk.f32.mxu1 %vm34_vm0, %v22_v6  ;;  %469 = vmatprep.subr.bf16.mxu0 %v468_v3  ;;  %v24_v11 = vld [vmem:[%s810_s0 + $0x50] sm:$0xff]  ;;  %v17_v12 = vld [vmem:[%s810_s0 + $0x18] sm:$0xff]  ;;  %v18_v14 = vld [vmem:[%s810_s0 + $0x20] sm:$0xff] }
   0x5   :  { %476 = vmatprep.subr.bf16.mxu1 %v468_v3  ;;  %471 = vmatpush3.bf16.msra.mxu0 %v468_v3  ;;  %v25_v13 = vld [vmem:[%s810_s0 + $0x58] sm:$0xff]  ;;  %v26_v15 = vld [vmem:[%s810_s0 + $0x60] sm:$0xff]  ;;  %v19_v16 = vld [vmem:[%s810_s0 + $0x28] sm:$0xff] }
   0x6   :  { %478 = vmatpush3.bf16.msra.mxu1 %v468_v3  ;;  %473 = vmatprep.subr.bf16.mxu0 %v472_v7  ;;  %v27_v17 = vld [vmem:[%s810_s0 + $0x68] sm:$0xff]  ;;  %v20_v18 = vld [vmem:[%s810_s0 + $0x30] sm:$0xff]  ;;  %v21_v20 = vld [vmem:[%s810_s0 + $0x38] sm:$0xff] }
   0x7   :  { %477 = vmatprep.subr.bf16.mxu1 %v472_v7  ;;  %v28_v19 = vld [vmem:[%s810_s0 + $0x70] sm:$0xff]  ;;  %v29_v21 = vld [vmem:[%s810_s0 + $0x78] sm:$0xff] }
   0x9   :  { %475 = vmatpush3.bf16.msra.mxu0 %v472_v7 }
   0xa   :  { %479 = vmatpush3.bf16.msra.mxu1 %v472_v7 }
   0xc   :  { %445 = vmatmul.mubr.msk.f32.vlgmr.msra.gmra.mrb[0].mxu0 %vm34_vm0, %v15_v8 }
   0xd   :  { %457 = vmatmul.mubr.msk.f32.vlgmr.msra.gmra.mrb[0].mxu1 %vm34_vm0, %v23_v9  ;;  %447 = vmatprep.mubr.msk.f32.mxu0 %vm34_vm0, %v16_v10 }
   0xe   :  { %459 = vmatprep.mubr.msk.f32.mxu1 %vm34_vm0, %v24_v11 }
  0x10   :  { %448 = vmatmul.mubr.msk.f32.gmra.mrb[2].mxu0 %vm34_vm0, %v17_v12 }
  0x11   :  { %460 = vmatmul.mubr.msk.f32.gmra.mrb[2].mxu1 %vm34_vm0, %v25_v13  ;;  %450 = vmatprep.mubr.msk.f32.mxu0 %vm34_vm0, %v18_v14 }
  0x12   :  { %462 = vmatprep.mubr.msk.f32.mxu1 %vm34_vm0, %v26_v15 }
  0x14   :  { %451 = vmatmul.mubr.msk.f32.gmra.mrb[4].mxu0 %vm34_vm0, %v19_v16 }
  0x15   :  { %463 = vmatmul.mubr.msk.f32.gmra.mrb[4].mxu1 %vm34_vm0, %v27_v17  ;;  %453 = vmatprep.mubr.msk.f32.mxu0 %vm34_vm0, %v20_v18 }
  0x16   :  { %465 = vmatprep.mubr.msk.f32.mxu1 %vm34_vm0, %v28_v19 }
  0x18   :  { %454 = vmatmul.mubr.msk.f32.gmra.mrb[6].mxu0 %vm34_vm0, %v21_v20 }
  0x19   :  { %466 = vmatmul.mubr.msk.f32.gmra.mrb[6].mxu1 %vm34_vm0, %v29_v21 }
  0xdf   :  { %v446_v22 = vpop.f32.mrb[0].mxu0 }
  0xe0   :  { %v458_v23 = vpop.f32.mrb[0].mxu1  ;;  %229 = vst.msk [vmem:[%s811_s2 + $0x8] sm:$0xff] %vm34_vm0, %v446_v22  ;;  %262 = vrot.lane.b32.xlu0 %v446_v22, %s482_s5  ;;  %v149_v25 = vpop.f32.mrb[1].mxu0 }
  0xe1   :  { %237 = vst.msk [vmem:[%s811_s2 + $0x48] sm:$0xff] %vm34_vm0, %v458_v23  ;;  %278 = vrot.lane.b32.xlu1 %v458_v23, %s482_s5  ;;  %v189_v24 = vpop.f32.mrb[1].mxu1  ;;  %228 = vst.msk [vmem:[%s811_s2] sm:$0xff] %vm34_vm0, %v149_v25 }
  0xe2   :  { %236 = vst.msk [vmem:[%s811_s2 + $0x40] sm:$0xff] %vm34_vm0, %v189_v24 }
  0xe3   :  { %v449_v26 = vpop.f32.mrb[2].mxu0 }
  0xe4   :  { %v461_v27 = vpop.f32.mrb[2].mxu1  ;;  %260 = vrot.lane.b32.xlu0 %v149_v25, %s482_s5  ;;  %231 = vst.msk [vmem:[%s811_s2 + $0x18] sm:$0xff] %vm34_vm0, %v449_v26  ;;  %v159_v28 = vpop.f32.mrb[3].mxu0 }
  0xe5   :  { %326 = vrot.lane.b32.xlu1 %v446_v22, %s483_s9  ;;  %239 = vst.msk [vmem:[%s811_s2 + $0x58] sm:$0xff] %vm34_vm0, %v461_v27  ;;  %v199_v29 = vpop.f32.mrb[3].mxu1  ;;  %230 = vst.msk [vmem:[%s811_s2 + $0x10] sm:$0xff] %vm34_vm0, %v159_v28 }
  0xe6   :  { %238 = vst.msk [vmem:[%s811_s2 + $0x50] sm:$0xff] %vm34_vm0, %v199_v29 }
  0xe7   :  { %v452_v30 = vpop.f32.mrb[4].mxu0 }
  0xe8   :  { %v464_v31 = vpop.f32.mrb[4].mxu1  ;;  %276 = vrot.lane.b32.xlu0 %v189_v24, %s482_s5  ;;  %233 = vst.msk [vmem:[%s811_s2 + $0x28] sm:$0xff] %vm34_vm0, %v452_v30  ;;  %v169_v32 = vpop.f32.mrb[5].mxu0 }
  0xe9   :  { %342 = vrot.lane.b32.xlu1 %v458_v23, %s483_s9  ;;  %241 = vst.msk [vmem:[%s811_s2 + $0x68] sm:$0xff] %vm34_vm0, %v464_v31  ;;  %v209_v33 = vpop.f32.mrb[5].mxu1  ;;  %232 = vst.msk [vmem:[%s811_s2 + $0x20] sm:$0xff] %vm34_vm0, %v169_v32 }
  0xea   :  { %240 = vst.msk [vmem:[%s811_s2 + $0x60] sm:$0xff] %vm34_vm0, %v209_v33 }
  0xeb   :  { %v455_v34 = vpop.f32.mrb[6].mxu0 }
  0xec   :  { %v467_v35 = vpop.f32.mrb[6].mxu1  ;;  %324 = vrot.lane.b32.xlu0 %v149_v25, %s483_s9  ;;  %235 = vst.msk [vmem:[%s811_s2 + $0x38] sm:$0xff] %vm34_vm0, %v455_v34  ;;  %v179_v36 = vpop.f32.mrb[7].mxu0 }
  0xed   :  { %266 = vrot.lane.b32.xlu1 %v449_v26, %s482_s5  ;;  %243 = vst.msk [vmem:[%s811_s2 + $0x78] sm:$0xff] %vm34_vm0, %v467_v35  ;;  %v219_v37 = vpop.f32.mrb[7].mxu1  ;;  %234 = vst.msk [vmem:[%s811_s2 + $0x30] sm:$0xff] %vm34_vm0, %v179_v36 }
  0xee   :  { %242 = vst.msk [vmem:[%s811_s2 + $0x70] sm:$0xff] %vm34_vm0, %v219_v37 }
  0xf0   :  { %340 = vrot.lane.b32.xlu0 %v189_v24, %s483_s9 }
  0xf1   :  { %282 = vrot.lane.b32.xlu1 %v461_v27, %s482_s5 }
  0xf4   :  { %280 = vrot.lane.b32.xlu0 %v199_v29, %s482_s5 }
  0xf5   :  { %330 = vrot.lane.b32.xlu1 %v449_v26, %s483_s9 }
  0xf8   :  { %328 = vrot.lane.b32.xlu0 %v159_v28, %s483_s9 }
  0xf9   :  { %346 = vrot.lane.b32.xlu1 %v461_v27, %s483_s9 }
  0xfc   :  { %344 = vrot.lane.b32.xlu0 %v199_v29, %s483_s9 }
  0xfd   :  { %264 = vrot.lane.b32.xlu1 %v159_v28, %s482_s5 }
 0x100   :  { %268 = vrot.lane.b32.xlu0 %v169_v32, %s482_s5 }
 0x101   :  { %270 = vrot.lane.b32.xlu1 %v452_v30, %s482_s5 }
 0x104   :  { %284 = vrot.lane.b32.xlu0 %v209_v33, %s482_s5 }
 0x105   :  { %286 = vrot.lane.b32.xlu1 %v464_v31, %s482_s5 }
 0x108   :  { %332 = vrot.lane.b32.xlu0 %v169_v32, %s483_s9 }
 0x109   :  { %334 = vrot.lane.b32.xlu1 %v452_v30, %s483_s9 }
 0x10c   :  { %348 = vrot.lane.b32.xlu0 %v209_v33, %s483_s9 }
 0x10d   :  { %350 = vrot.lane.b32.xlu1 %v464_v31, %s483_s9 }
 0x110   :  { %272 = vrot.lane.b32.xlu0 %v179_v36, %s482_s5 }
 0x111   :  { %274 = vrot.lane.b32.xlu1 %v455_v34, %s482_s5 }
 0x114   :  { %288 = vrot.lane.b32.xlu0 %v219_v37, %s482_s5 }
 0x115   :  { %290 = vrot.lane.b32.xlu1 %v467_v35, %s482_s5 }
 0x118   :  { %336 = vrot.lane.b32.xlu0 %v179_v36, %s483_s9 }
 0x119   :  { %338 = vrot.lane.b32.xlu1 %v455_v34, %s483_s9 }
 0x11c   :  { %352 = vrot.lane.b32.xlu0 %v219_v37, %s483_s9 }
 0x11d   :  { %354 = vrot.lane.b32.xlu1 %v467_v35, %s483_s9 }
 0x152   :  { %v263_v39 = vpop.permute.xlu0 %262 }
 0x153   :  { %v279_v38 = vpop.permute.xlu1 %278  ;;  %309 = vst.msk [vmem:[%s812_s3 + $0x8] sm:$0xff] %vm34_vm0, %v263_v39 }
 0x154   :  { %317 = vst.msk [vmem:[%s812_s3 + $0x48] sm:$0xff] %vm34_vm0, %v279_v38 }
 0x156   :  { %v261_v41 = vpop.permute.xlu0 %260 }
 0x157   :  { %v327_v40 = vpop.permute.xlu1 %326  ;;  %308 = vst.msk [vmem:[%s812_s3] sm:$0xff] %vm34_vm0, %v261_v41 }
 0x158   :  { %373 = vst.msk [vmem:[%s813_s4 + $0x8] sm:$0xff] %vm34_vm0, %v327_v40 }
 0x15a   :  { %v277_v43 = vpop.permute.xlu0 %276 }
 0x15b   :  { %v343_v42 = vpop.permute.xlu1 %342  ;;  %316 = vst.msk [vmem:[%s812_s3 + $0x40] sm:$0xff] %vm34_vm0, %v277_v43 }
 0x15c   :  { %381 = vst.msk [vmem:[%s813_s4 + $0x48] sm:$0xff] %vm34_vm0, %v343_v42 }
 0x15e   :  { %v325_v44 = vpop.permute.xlu0 %324 }
 0x15f   :  { %v267_v45 = vpop.permute.xlu1 %266  ;;  %372 = vst.msk [vmem:[%s813_s4] sm:$0xff] %vm34_vm0, %v325_v44 }
 0x160   :  { %311 = vst.msk [vmem:[%s812_s3 + $0x18] sm:$0xff] %vm34_vm0, %v267_v45 }
 0x162   :  { %v341_v46 = vpop.permute.xlu0 %340 }
 0x163   :  { %v283_v47 = vpop.permute.xlu1 %282  ;;  %380 = vst.msk [vmem:[%s813_s4 + $0x40] sm:$0xff] %vm34_vm0, %v341_v46 }
 0x164   :  { %319 = vst.msk [vmem:[%s812_s3 + $0x58] sm:$0xff] %vm34_vm0, %v283_v47 }
 0x166   :  { %v281_v48 = vpop.permute.xlu0 %280 }
 0x167   :  { %v331_v49 = vpop.permute.xlu1 %330  ;;  %318 = vst.msk [vmem:[%s812_s3 + $0x50] sm:$0xff] %vm34_vm0, %v281_v48 }
 0x168   :  { %375 = vst.msk [vmem:[%s813_s4 + $0x18] sm:$0xff] %vm34_vm0, %v331_v49 }
 0x16a   :  { %v329_v51 = vpop.permute.xlu0 %328 }
 0x16b   :  { %v347_v50 = vpop.permute.xlu1 %346  ;;  %374 = vst.msk [vmem:[%s813_s4 + $0x10] sm:$0xff] %vm34_vm0, %v329_v51 }
 0x16c   :  { %383 = vst.msk [vmem:[%s813_s4 + $0x58] sm:$0xff] %vm34_vm0, %v347_v50 }
 0x16e   :  { %v345_v52 = vpop.permute.xlu0 %344 }
 0x16f   :  { %v265_v53 = vpop.permute.xlu1 %264  ;;  %382 = vst.msk [vmem:[%s813_s4 + $0x50] sm:$0xff] %vm34_vm0, %v345_v52 }
 0x170   :  { %310 = vst.msk [vmem:[%s812_s3 + $0x10] sm:$0xff] %vm34_vm0, %v265_v53 }
 0x172   :  { %v269_v55 = vpop.permute.xlu0 %268 }
 0x173   :  { %v271_v54 = vpop.permute.xlu1 %270  ;;  %312 = vst.msk [vmem:[%s812_s3 + $0x20] sm:$0xff] %vm34_vm0, %v269_v55 }
 0x174   :  { %313 = vst.msk [vmem:[%s812_s3 + $0x28] sm:$0xff] %vm34_vm0, %v271_v54 }
 0x176   :  { %v285_v57 = vpop.permute.xlu0 %284 }
 0x177   :  { %v287_v56 = vpop.permute.xlu1 %286  ;;  %320 = vst.msk [vmem:[%s812_s3 + $0x60] sm:$0xff] %vm34_vm0, %v285_v57 }
 0x178   :  { %321 = vst.msk [vmem:[%s812_s3 + $0x68] sm:$0xff] %vm34_vm0, %v287_v56 }
 0x17a   :  { %v333_v59 = vpop.permute.xlu0 %332 }
 0x17b   :  { %v335_v58 = vpop.permute.xlu1 %334  ;;  %376 = vst.msk [vmem:[%s813_s4 + $0x20] sm:$0xff] %vm34_vm0, %v333_v59 }
 0x17c   :  { %377 = vst.msk [vmem:[%s813_s4 + $0x28] sm:$0xff] %vm34_vm0, %v335_v58 }
 0x17e   :  { %v349_v61 = vpop.permute.xlu0 %348 }
 0x17f   :  { %v351_v60 = vpop.permute.xlu1 %350  ;;  %384 = vst.msk [vmem:[%s813_s4 + $0x60] sm:$0xff] %vm34_vm0, %v349_v61 }
 0x180   :  { %385 = vst.msk [vmem:[%s813_s4 + $0x68] sm:$0xff] %vm34_vm0, %v351_v60 }
 0x182   :  { %v273_v63 = vpop.permute.xlu0 %272 }
 0x183   :  { %v275_v62 = vpop.permute.xlu1 %274  ;;  %314 = vst.msk [vmem:[%s812_s3 + $0x30] sm:$0xff] %vm34_vm0, %v273_v63 }
 0x184   :  { %315 = vst.msk [vmem:[%s812_s3 + $0x38] sm:$0xff] %vm34_vm0, %v275_v62 }
 0x186   :  { %v289_v1 = vpop.permute.xlu0 %288 }
 0x187   :  { %v291_v0 = vpop.permute.xlu1 %290  ;;  %322 = vst.msk [vmem:[%s812_s3 + $0x70] sm:$0xff] %vm34_vm0, %v289_v1 }
 0x188   :  { %323 = vst.msk [vmem:[%s812_s3 + $0x78] sm:$0xff] %vm34_vm0, %v291_v0 }
 0x18a   :  { %v337_v3 = vpop.permute.xlu0 %336 }
 0x18b   :  { %v339_v2 = vpop.permute.xlu1 %338  ;;  %378 = vst.msk [vmem:[%s813_s4 + $0x30] sm:$0xff] %vm34_vm0, %v337_v3 }
 0x18c   :  { %379 = vst.msk [vmem:[%s813_s4 + $0x38] sm:$0xff] %vm34_vm0, %v339_v2 }
 0x18e   :  { %v353_v5 = vpop.permute.xlu0 %352 }
 0x18f   :  { %v355_v4 = vpop.permute.xlu1 %354  ;;  %386 = vst.msk [vmem:[%s813_s4 + $0x70] sm:$0xff] %vm34_vm0, %v353_v5 }
 0x190   :  { %387 = vst.msk [vmem:[%s813_s4 + $0x78] sm:$0xff] %vm34_vm0, %v355_v4 }

</bundles_post_ra>
